<compile_context>
chip_gen: v5e
topology: v5e:2x2
jax: 0.10.0
libtpu: 0.0.40
codegen_flags: <defaults>
</compile_context>

<pallas_src>
import functools

import jax
import jax.numpy as jnp
from jax.experimental import pallas as pl
from jax.experimental.pallas import tpu as pltpu

LANE = 128
_ROW_TILE_TARGET = 2048   # target M (flattened rows of the per-tile matmul)


# ------------------------------ Pallas kernel -------------------------------

def _conv_bn_lrelu_kernel(x_hbm, w_ref, shift_ref, o_ref,
                          xbuf, acc_ref, sem, *,
                          tile_m, wpitch, negative_slope):
    """Fused 3x3 conv (3 MXU matmuls, K=Kp) + folded BatchNorm + LeakyReLU.

    x_hbm:     (N, (H_pad+2)*Wp, Kp) bf16  HBM, rows flattened (pl.ANY, manual DMA)
    w_ref:     (3, Kp, Cp)           bf16  BN-scale-folded weights (VMEM resident)
    shift_ref: (1, Cp)               f32   beta - mean * scale
    o_ref:     (1, 1, tile_m, Cp)    bf16  lane-dense output tile
    xbuf:      (2, tile_m + 2*Wp, Kp) bf16 double-buffered halo window
    acc_ref:   (tile_m, Cp)          f32   accumulator scratch
    sem:       DMA semaphores (2,)
    """
    i = pl.program_id(0)                 # batch element
    t = pl.program_id(1)                 # row tile within the image
    nt = pl.num_programs(1)
    halo_m = tile_m + 2 * wpitch
    slot = t % 2

    def fetch(tt, s):
        start = pl.multiple_of(tt * tile_m, 16)     # Wp is a multiple of 16
        pltpu.make_async_copy(x_hbm.at[i, pl.ds(start, halo_m), :],
                              xbuf.at[s], sem.at[s]).start()

    @pl.when(t == 0)
    def _():
        fetch(t, 0)                      # first tile of this image: prime slot 0

    # wait for this tile's halo window (primed above or prefetched at t-1)
    pltpu.make_async_copy(x_hbm.at[i, pl.ds(0, halo_m), :],
                          xbuf.at[slot], sem.at[slot]).wait()

    # prefetch the next row tile of the SAME image into the other slot
    @pl.when(t + 1 < nt)
    def _():
        fetch(t + 1, 1 - slot)

    buf = xbuf.at[slot]
    # 3 MXU matmuls, one per kernel row ky; each tap is a sublane-aligned row slice
    acc_ref[...] = jnp.dot(buf[0:tile_m, :], w_ref[0],
                           preferred_element_type=jnp.float32)
    acc_ref[...] += jnp.dot(buf[wpitch:wpitch + tile_m, :], w_ref[1],
                            preferred_element_type=jnp.float32)
    acc_ref[...] += jnp.dot(buf[2 * wpitch:2 * wpitch + tile_m, :], w_ref[2],
                            preferred_element_type=jnp.float32)

    y = acc_ref[...] + shift_ref[...]            # folded BN (scale is in the weights)
    y = jnp.maximum(y, negative_slope * y)       # LeakyReLU(0.2)
    o_ref[0, 0, :, :] = y.astype(o_ref.dtype)


# ------------------------------ sizing helpers --------------------------------

def _vmem_limit_bytes():
    # ~3/4 of physical VMEM (64 MiB on v7x, 128 MiB on v5e/v6e); safe fallback.
    try:
        cap = pltpu.get_tpu_info().vmem_capacity_bytes
        return int(min(cap * 3 // 4, 96 * 1024 * 1024))
    except Exception:
        return 48 * 1024 * 1024


def _pick_tile_rows(h, wp, kp, cp, vmem_limit):
    """Output image rows per tile, targeting ~_ROW_TILE_TARGET flattened rows,
    capped by a conservative VMEM budget (double-buffered in/out + weights + acc)."""
    per_row = wp * (4 * kp + 4 * cp + 4 * cp)      # 2x bf16 in, 2x bf16 out, f32 acc
    fixed = 2 * 3 * kp * cp * 2 + 16 * wp * kp     # weights (2 bufs) + halo rows
    budget = vmem_limit * 3 // 4 - fixed
    th_vmem = max(1, budget // per_row) if budget > per_row else 1
    th = max(1, min(h, max(1, _ROW_TILE_TARGET // wp), th_vmem))
    return int(th)


# ------------------------------ wrapper (JAX) --------------------------------

def discriminator_block_forward(x_nchw, params, *, stride=1,
                                negative_slope=0.2, eps=1e-5):
    """conv1 (3x3, pad=1, no bias) -> bn1 (inference stats, folded) -> LeakyReLU.

    Input/output are NCHW (PyTorch layout).
    """
    # TODO(synk): train-mode BatchNorm (batch statistics) is not implemented;
    #             inference-mode (running stats) BN is folded into the weights/shift.
    w = params["weight"]
    cout, cin, kh, kw = w.shape
    assert kh == 3 and kw == 3, "only kernel=3 (padding=1) is supported"
    n, c, h, wdt = x_nchw.shape
    assert c == cin

    # fold BatchNorm (inference) into the conv weights (scale) and a per-channel shift
    scale = params["gamma"] / jnp.sqrt(params["running_var"] + eps)
    shift = params["beta"] - params["running_mean"] * scale

    cp_align = 256 if cout >= 256 else LANE          # fill 256-wide MXU on v6e/v7x
    cp = ((cout + cp_align - 1) // cp_align) * cp_align
    kp = ((3 * cin + LANE - 1) // LANE) * LANE       # lane-dense K
    wp = ((wdt + 15) // 16) * 16                     # sublane-aligned (bf16) row pitch

    # ---- plain-JAX glue (bf16): layout, spatial pad, width(kx)-tap concat, pads ----
    x = jnp.transpose(x_nchw, (0, 2, 3, 1)).astype(jnp.bfloat16)       # NHWC bf16
    xpad = jnp.pad(x, ((0, 0), (1, 1), (1, 1), (0, 0)))                # (N,H+2,W+2,C)
    xw = jnp.concatenate([xpad[:, :, kx:kx + wdt, :] for kx in range(3)],
                         axis=-1)                                      # (N,H+2,W,3C)

    vmem_limit = _vmem_limit_bytes()
    th = _pick_tile_rows(h, wp, kp, cp, vmem_limit)
    nt = pl.cdiv(h, th)
    pad_rows = nt * th - h

    # bottom rows (tiling), width -> Wp, K -> Kp; single materialized HBM array,
    # rows flattened so each ky tap / halo window is a contiguous row range
    xw = jnp.pad(xw, ((0, 0), (0, pad_rows), (0, wp - wdt), (0, kp - 3 * cin)))
    x_flat = xw.reshape(n, (nt * th + 2) * wp, kp)

    # weights: (Cout,Cin,3,3) -> (ky, kx*Cin, Cout); fold BN scale; pad; bf16
    w3 = jnp.transpose(w, (2, 3, 1, 0)).reshape(3, 3 * cin, cout)
    w3 = w3 * scale[None, None, :]
    w3 = jnp.pad(w3, ((0, 0), (0, kp - 3 * cin), (0, cp - cout))).astype(jnp.bfloat16)
    shift_p = jnp.pad(shift.astype(jnp.float32), (0, cp - cout)).reshape(1, cp)

    tile_m = th * wp
    # ------------------------------- pallas_call ------------------------------
    out = pl.pallas_call(
        functools.partial(_conv_bn_lrelu_kernel, tile_m=tile_m, wpitch=wp,
                          negative_slope=negative_slope),
        out_shape=jax.ShapeDtypeStruct((n, nt, tile_m, cp), jnp.bfloat16),
        grid=(n, nt),
        in_specs=[
            pl.BlockSpec(memory_space=pl.ANY),                      # x stays in HBM
            pl.BlockSpec((3, kp, cp), lambda i, t: (0, 0, 0)),      # resident folded W
            pl.BlockSpec((1, cp), lambda i, t: (0, 0)),             # resident BN shift
        ],
        out_specs=pl.BlockSpec((1, 1, tile_m, cp), lambda i, t: (i, t, 0, 0)),
        scratch_shapes=[
            pltpu.VMEM((2, tile_m + 2 * wp, kp), jnp.bfloat16),     # halo double buffer
            pltpu.VMEM((tile_m, cp), jnp.float32),                  # f32 accumulator
            pltpu.SemaphoreType.DMA((2,)),
        ],
        compiler_params=pltpu.CompilerParams(
            # batch axis parallel (v7x 2-TC sharding); row tiles sequential so the
            # in-kernel prefetch of tile t+1 is always valid within one image.
            dimension_semantics=("parallel", "arbitrary"),
            vmem_limit_bytes=vmem_limit),
    )(x_flat, w3, shift_p)

    out = out.reshape(n, nt * th, wp, cp)[:, :h, :wdt, :cout]
    if stride > 1:
        # TODO(synk): dedicated strided kernel; subsampling the stride-1 output is
        # mathematically identical for kernel=3 / padding=1 but does ~stride^2 extra work.
        out = out[:, ::stride, ::stride, :]
    # TODO(synk): consumers that accept NHWC / bf16 can skip this transpose + cast.
    return jnp.transpose(out, (0, 3, 1, 2)).astype(x_nchw.dtype)   # NHWC -> NCHW


# ------------------------------ params / reference ---------------------------

def init_params(key, in_channels, out_channels):
    kw_, kg, kb, km, kv = jax.random.split(key, 5)
    return dict(
        weight=jax.random.normal(kw_, (out_channels, in_channels, 3, 3), jnp.float32) * 0.05,
        gamma=1.0 + 0.1 * jax.random.normal(kg, (out_channels,), jnp.float32),
        beta=0.1 * jax.random.normal(kb, (out_channels,), jnp.float32),
        running_mean=0.1 * jax.random.normal(km, (out_channels,), jnp.float32),
        running_var=0.5 + 0.5 * jnp.abs(jax.random.normal(kv, (out_channels,), jnp.float32)),
    )


def discriminator_block_reference(x_nchw, params, *, stride=1,
                                  negative_slope=0.2, eps=1e-5):
    y = jax.lax.conv_general_dilated(
        x_nchw, params["weight"], window_strides=(stride, stride),
        padding=((1, 1), (1, 1)), dimension_numbers=("NCHW", "OIHW", "NCHW"))
    scale = params["gamma"] / jnp.sqrt(params["running_var"] + eps)
    shift = params["beta"] - params["running_mean"] * scale
    y = y * scale[None, :, None, None] + shift[None, :, None, None]
    return jnp.where(y > 0, y, negative_slope * y)


# ----------------------------------- main ------------------------------------

if __name__ == "__main__":
    key = jax.random.PRNGKey(0)
    k_x, k_p = jax.random.split(key)

    N, C_IN, C_OUT, H, W = 2, 4, 8, 16, 16
    STRIDE = 1

    x = jax.random.normal(k_x, (N, C_IN, H, W), jnp.float32)
    params = init_params(k_p, C_IN, C_OUT)

    fwd = jax.jit(functools.partial(discriminator_block_forward, stride=STRIDE))
    out = jax.block_until_ready(fwd(x, params))

    ref = discriminator_block_reference(x, params, stride=STRIDE)
    assert out.shape == ref.shape, (out.shape, ref.shape)
    # bf16 inputs/weights/output with f32 accumulation -> small rounding vs f32 ref
    assert jnp.allclose(out, ref, atol=3e-2, rtol=3e-2), "mismatch vs XLA reference"

    print("KERNEL_OK")
</pallas_src>

<mosaic_0001>
module attributes {stable_mosaic.version = 11 : i64} {
  func.func @_conv_bn_lrelu_kernel(%arg0: i32, %arg1: i32, %arg2: memref<2x288x128xbf16, #tpu.memory_space<any>>, %arg3: memref<3x128x128xbf16, #tpu.memory_space<vmem>>, %arg4: memref<1x128xf32, #tpu.memory_space<vmem>>, %arg5: memref<1x1x256x128xbf16, #tpu.memory_space<vmem>>, %arg6: memref<2x288x128xbf16, #tpu.memory_space<vmem>>, %arg7: memref<256x128xf32, #tpu.memory_space<vmem>>, %arg8: memref<2x!tpu.dma_semaphore, #tpu.memory_space<semaphore_mem>>) attributes {dimension_semantics = [#tpu.dimension_semantics<parallel>, #tpu.dimension_semantics<arbitrary>], iteration_bounds = array<i64: 2, 1>, scalar_prefetch = 0 : i64, scratch_operands = 3 : i64, tpu.core_type = #tpu.core_type<tc>, window_params = [{}, {pipeline_mode = #tpu.pipeline_mode<synchronous>, transform_indices = @transform_1, window_bounds = array<i64: 3, 128, 128>}, {pipeline_mode = #tpu.pipeline_mode<synchronous>, transform_indices = @transform_2, window_bounds = array<i64: 1, 128>}, {transform_indices = @transform_3, window_bounds = array<i64: 1, 1, 256, 128>}]} {
    %c2_i32 = arith.constant 2 : i32
    %c0_i32 = arith.constant 0 : i32
    %0 = arith.cmpi eq, %c2_i32, %c0_i32 : i32
    %c1_i32 = arith.constant 1 : i32
    %1 = arith.select %0, %c1_i32, %c2_i32 : i32
    %2 = arith.remsi %arg1, %1 : i32
    %c0_i32_0 = arith.constant 0 : i32
    %3 = arith.cmpi ne, %2, %c0_i32_0 : i32
    %c0_i32_1 = arith.constant 0 : i32
    %4 = arith.cmpi slt, %2, %c0_i32_1 : i32
    %c0_i32_2 = arith.constant 0 : i32
    %5 = arith.cmpi slt, %1, %c0_i32_2 : i32
    %6 = arith.xori %4, %5 : i1
    %7 = arith.andi %6, %3 : i1
    %8 = arith.addi %2, %1 : i32
    %9 = arith.select %7, %8, %2 : i32
    %c0_i32_3 = arith.constant 0 : i32
    %10 = arith.cmpi eq, %arg1, %c0_i32_3 : i32
    %11 = arith.extui %10 : i1 to i32
    %c0_i32_4 = arith.constant 0 : i32
    %12 = arith.cmpi ne, %11, %c0_i32_4 : i32
    scf.if %12 {
      %c256_i32 = arith.constant 256 : i32
      %59 = arith.muli %arg1, %c256_i32 : i32
      %60 = tpu.assume_multiple %59, 16 : i32
      %c0_i32_49 = arith.constant 0 : i32
      %c0_i32_50 = arith.constant 0 : i32
      %c0_i32_51 = arith.constant 0 : i32
      %61 = tpu.memref_slice %arg2[%arg0, %60, %c0_i32_51] : memref<2x288x128xbf16, #tpu.memory_space<any>> -> memref<1x288x128xbf16, #tpu.memory_space<any>>
      %62 = tpu.memref_squeeze %61 : memref<1x288x128xbf16, #tpu.memory_space<any>> -> memref<288x128xbf16, #tpu.memory_space<any>>
      %c0_i32_52 = arith.constant 0 : i32
      %c0_i32_53 = arith.constant 0 : i32
      %63 = tpu.memref_slice %arg6[%c0_i32_49, %c0_i32_52, %c0_i32_53] : memref<2x288x128xbf16, #tpu.memory_space<vmem>> -> memref<1x288x128xbf16, #tpu.memory_space<vmem>>
      %64 = tpu.memref_squeeze %63 : memref<1x288x128xbf16, #tpu.memory_space<vmem>> -> memref<288x128xbf16, #tpu.memory_space<vmem>>
      %65 = tpu.memref_slice %arg8[%c0_i32_50] : memref<2x!tpu.dma_semaphore, #tpu.memory_space<semaphore_mem>> -> memref<1x!tpu.dma_semaphore, #tpu.memory_space<semaphore_mem>>
      %66 = tpu.memref_squeeze %65 : memref<1x!tpu.dma_semaphore, #tpu.memory_space<semaphore_mem>> -> memref<!tpu.dma_semaphore, #tpu.memory_space<semaphore_mem>>
      tpu.enqueue_dma source(%62 : memref<288x128xbf16, #tpu.memory_space<any>>) target(%64 : memref<288x128xbf16, #tpu.memory_space<vmem>>) target_semaphore(%66 : memref<!tpu.dma_semaphore, #tpu.memory_space<semaphore_mem>>)
    } else {
    }
    %c0_i32_5 = arith.constant 0 : i32
    %c0_i32_6 = arith.constant 0 : i32
    %13 = tpu.memref_slice %arg2[%arg0, %c0_i32_5, %c0_i32_6] : memref<2x288x128xbf16, #tpu.memory_space<any>> -> memref<1x288x128xbf16, #tpu.memory_space<any>>
    %14 = tpu.memref_squeeze %13 : memref<1x288x128xbf16, #tpu.memory_space<any>> -> memref<288x128xbf16, #tpu.memory_space<any>>
    %c0_i32_7 = arith.constant 0 : i32
    %c0_i32_8 = arith.constant 0 : i32
    %15 = tpu.memref_slice %arg6[%9, %c0_i32_7, %c0_i32_8] : memref<2x288x128xbf16, #tpu.memory_space<vmem>> -> memref<1x288x128xbf16, #tpu.memory_space<vmem>>
    %16 = tpu.memref_squeeze %15 : memref<1x288x128xbf16, #tpu.memory_space<vmem>> -> memref<288x128xbf16, #tpu.memory_space<vmem>>
    %17 = tpu.memref_slice %arg8[%9] : memref<2x!tpu.dma_semaphore, #tpu.memory_space<semaphore_mem>> -> memref<1x!tpu.dma_semaphore, #tpu.memory_space<semaphore_mem>>
    %18 = tpu.memref_squeeze %17 : memref<1x!tpu.dma_semaphore, #tpu.memory_space<semaphore_mem>> -> memref<!tpu.dma_semaphore, #tpu.memory_space<semaphore_mem>>
    tpu.wait_dma2 semaphore(%18 : memref<!tpu.dma_semaphore, #tpu.memory_space<semaphore_mem>>) src(%14 : memref<288x128xbf16, #tpu.memory_space<any>>) dst(%16 : memref<288x128xbf16, #tpu.memory_space<vmem>>)
    %c1_i32_9 = arith.constant 1 : i32
    %19 = arith.addi %arg1, %c1_i32_9 : i32
    %c1_i32_10 = arith.constant 1 : i32
    %20 = arith.cmpi slt, %19, %c1_i32_10 : i32
    %21 = arith.extui %20 : i1 to i32
    %c0_i32_11 = arith.constant 0 : i32
    %22 = arith.cmpi ne, %21, %c0_i32_11 : i32
    scf.if %22 {
      %c1_i32_49 = arith.constant 1 : i32
      %59 = arith.addi %arg1, %c1_i32_49 : i32
      %c1_i32_50 = arith.constant 1 : i32
      %60 = arith.subi %c1_i32_50, %9 : i32
      %c256_i32 = arith.constant 256 : i32
      %61 = arith.muli %59, %c256_i32 : i32
      %62 = tpu.assume_multiple %61, 16 : i32
      %c0_i32_51 = arith.constant 0 : i32
      %63 = tpu.memref_slice %arg2[%arg0, %62, %c0_i32_51] : memref<2x288x128xbf16, #tpu.memory_space<any>> -> memref<1x288x128xbf16, #tpu.memory_space<any>>
      %64 = tpu.memref_squeeze %63 : memref<1x288x128xbf16, #tpu.memory_space<any>> -> memref<288x128xbf16, #tpu.memory_space<any>>
      %c0_i32_52 = arith.constant 0 : i32
      %c0_i32_53 = arith.constant 0 : i32
      %65 = tpu.memref_slice %arg6[%60, %c0_i32_52, %c0_i32_53] : memref<2x288x128xbf16, #tpu.memory_space<vmem>> -> memref<1x288x128xbf16, #tpu.memory_space<vmem>>
      %66 = tpu.memref_squeeze %65 : memref<1x288x128xbf16, #tpu.memory_space<vmem>> -> memref<288x128xbf16, #tpu.memory_space<vmem>>
      %67 = tpu.memref_slice %arg8[%60] : memref<2x!tpu.dma_semaphore, #tpu.memory_space<semaphore_mem>> -> memref<1x!tpu.dma_semaphore, #tpu.memory_space<semaphore_mem>>
      %68 = tpu.memref_squeeze %67 : memref<1x!tpu.dma_semaphore, #tpu.memory_space<semaphore_mem>> -> memref<!tpu.dma_semaphore, #tpu.memory_space<semaphore_mem>>
      tpu.enqueue_dma source(%64 : memref<288x128xbf16, #tpu.memory_space<any>>) target(%66 : memref<288x128xbf16, #tpu.memory_space<vmem>>) target_semaphore(%68 : memref<!tpu.dma_semaphore, #tpu.memory_space<semaphore_mem>>)
    } else {
    }
    %c0_i32_12 = arith.constant 0 : i32
    %c0_i32_13 = arith.constant 0 : i32
    %23 = tpu.memref_slice %arg6[%9, %c0_i32_12, %c0_i32_13] : memref<2x288x128xbf16, #tpu.memory_space<vmem>> -> memref<1x288x128xbf16, #tpu.memory_space<vmem>>
    %24 = tpu.memref_squeeze %23 : memref<1x288x128xbf16, #tpu.memory_space<vmem>> -> memref<288x128xbf16, #tpu.memory_space<vmem>>
    %c0 = arith.constant 0 : index
    %c0_14 = arith.constant 0 : index
    %25 = vector.load %24[%c0, %c0_14] : memref<288x128xbf16, #tpu.memory_space<vmem>>, vector<256x128xbf16>
    %c0_15 = arith.constant 0 : index
    %c0_16 = arith.constant 0 : index
    %c0_17 = arith.constant 0 : index
    %26 = vector.load %arg3[%c0_15, %c0_16, %c0_17] : memref<3x128x128xbf16, #tpu.memory_space<vmem>>, vector<1x128x128xbf16>
    %27 = vector.shape_cast %26 : vector<1x128x128xbf16> to vector<128x128xbf16>
    %cst = arith.constant dense<0.000000e+00> : vector<256x128xf32>
    %28 = tpu.matmul %25, %27, %cst {dimension_numbers = #tpu.dot_dimension_numbers<[1], [0], [0], [1], [0, 0, 1, 1], [], []>} : vector<256x128xbf16>, vector<128x128xbf16>, vector<256x128xf32> -> vector<256x128xf32>
    %c0_18 = arith.constant 0 : index
    %c0_19 = arith.constant 0 : index
    %29 = vector.load %arg7[%c0_18, %c0_19] : memref<256x128xf32, #tpu.memory_space<vmem>>, vector<256x128xf32>
    tpu.vector_store %arg7[%c0_18, %c0_19], %28 {strides = array<i32>} : memref<256x128xf32, #tpu.memory_space<vmem>>, vector<256x128xf32>,
    %c0_20 = arith.constant 0 : index
    %c0_21 = arith.constant 0 : index
    %30 = vector.load %arg7[%c0_20, %c0_21] : memref<256x128xf32, #tpu.memory_space<vmem>>, vector<256x128xf32>
    %c0_i32_22 = arith.constant 0 : i32
    %c0_i32_23 = arith.constant 0 : i32
    %31 = tpu.memref_slice %arg6[%9, %c0_i32_22, %c0_i32_23] : memref<2x288x128xbf16, #tpu.memory_space<vmem>> -> memref<1x288x128xbf16, #tpu.memory_space<vmem>>
    %32 = tpu.memref_squeeze %31 : memref<1x288x128xbf16, #tpu.memory_space<vmem>> -> memref<288x128xbf16, #tpu.memory_space<vmem>>
    %c16 = arith.constant 16 : index
    %c0_24 = arith.constant 0 : index
    %33 = vector.load %32[%c16, %c0_24] : memref<288x128xbf16, #tpu.memory_space<vmem>>, vector<256x128xbf16>
    %c1 = arith.constant 1 : index
    %c0_25 = arith.constant 0 : index
    %c0_26 = arith.constant 0 : index
    %34 = vector.load %arg3[%c1, %c0_25, %c0_26] : memref<3x128x128xbf16, #tpu.memory_space<vmem>>, vector<1x128x128xbf16>
    %35 = vector.shape_cast %34 : vector<1x128x128xbf16> to vector<128x128xbf16>
    %cst_27 = arith.constant dense<0.000000e+00> : vector<256x128xf32>
    %36 = tpu.matmul %33, %35, %cst_27 {dimension_numbers = #tpu.dot_dimension_numbers<[1], [0], [0], [1], [0, 0, 1, 1], [], []>} : vector<256x128xbf16>, vector<128x128xbf16>, vector<256x128xf32> -> vector<256x128xf32>
    %37 = arith.addf %30, %36 : vector<256x128xf32>
    %c0_28 = arith.constant 0 : index
    %c0_29 = arith.constant 0 : index
    %38 = vector.load %arg7[%c0_28, %c0_29] : memref<256x128xf32, #tpu.memory_space<vmem>>, vector<256x128xf32>
    tpu.vector_store %arg7[%c0_28, %c0_29], %37 {strides = array<i32>} : memref<256x128xf32, #tpu.memory_space<vmem>>, vector<256x128xf32>,
    %c0_30 = arith.constant 0 : index
    %c0_31 = arith.constant 0 : index
    %39 = vector.load %arg7[%c0_30, %c0_31] : memref<256x128xf32, #tpu.memory_space<vmem>>, vector<256x128xf32>
    %c0_i32_32 = arith.constant 0 : i32
    %c0_i32_33 = arith.constant 0 : i32
    %40 = tpu.memref_slice %arg6[%9, %c0_i32_32, %c0_i32_33] : memref<2x288x128xbf16, #tpu.memory_space<vmem>> -> memref<1x288x128xbf16, #tpu.memory_space<vmem>>
    %41 = tpu.memref_squeeze %40 : memref<1x288x128xbf16, #tpu.memory_space<vmem>> -> memref<288x128xbf16, #tpu.memory_space<vmem>>
    %c32 = arith.constant 32 : index
    %c0_34 = arith.constant 0 : index
    %42 = vector.load %41[%c32, %c0_34] : memref<288x128xbf16, #tpu.memory_space<vmem>>, vector<256x128xbf16>
    %c2 = arith.constant 2 : index
    %c0_35 = arith.constant 0 : index
    %c0_36 = arith.constant 0 : index
    %43 = vector.load %arg3[%c2, %c0_35, %c0_36] : memref<3x128x128xbf16, #tpu.memory_space<vmem>>, vector<1x128x128xbf16>
    %44 = vector.shape_cast %43 : vector<1x128x128xbf16> to vector<128x128xbf16>
    %cst_37 = arith.constant dense<0.000000e+00> : vector<256x128xf32>
    %45 = tpu.matmul %42, %44, %cst_37 {dimension_numbers = #tpu.dot_dimension_numbers<[1], [0], [0], [1], [0, 0, 1, 1], [], []>} : vector<256x128xbf16>, vector<128x128xbf16>, vector<256x128xf32> -> vector<256x128xf32>
    %46 = arith.addf %39, %45 : vector<256x128xf32>
    %c0_38 = arith.constant 0 : index
    %c0_39 = arith.constant 0 : index
    %47 = vector.load %arg7[%c0_38, %c0_39] : memref<256x128xf32, #tpu.memory_space<vmem>>, vector<256x128xf32>
    tpu.vector_store %arg7[%c0_38, %c0_39], %46 {strides = array<i32>} : memref<256x128xf32, #tpu.memory_space<vmem>>, vector<256x128xf32>,
    %c0_40 = arith.constant 0 : index
    %c0_41 = arith.constant 0 : index
    %48 = vector.load %arg7[%c0_40, %c0_41] : memref<256x128xf32, #tpu.memory_space<vmem>>, vector<256x128xf32>
    %c0_42 = arith.constant 0 : index
    %c0_43 = arith.constant 0 : index
    %49 = vector.load %arg4[%c0_42, %c0_43] : memref<1x128xf32, #tpu.memory_space<vmem>>, vector<1x128xf32>
    %50 = vector.broadcast %49 : vector<1x128xf32> to vector<256x128xf32>
    %51 = arith.addf %48, %50 : vector<256x128xf32>
    %cst_44 = arith.constant 2.000000e-01 : f32
    %52 = vector.broadcast %cst_44 : f32 to vector<256x128xf32>
    %53 = arith.mulf %52, %51 : vector<256x128xf32>
    %54 = arith.maximumf %51, %53 : vector<256x128xf32>
    %55 = arith.truncf %54 : vector<256x128xf32> to vector<256x128xbf16>
    %c0_45 = arith.constant 0 : index
    %c0_46 = arith.constant 0 : index
    %c0_47 = arith.constant 0 : index
    %c0_48 = arith.constant 0 : index
    %56 = vector.load %arg5[%c0_45, %c0_46, %c0_47, %c0_48] : memref<1x1x256x128xbf16, #tpu.memory_space<vmem>>, vector<1x1x256x128xbf16>
    %57 = vector.shape_cast %56 : vector<1x1x256x128xbf16> to vector<256x128xbf16>
    %58 = vector.shape_cast %55 : vector<256x128xbf16> to vector<1x1x256x128xbf16>
    tpu.vector_store %arg5[%c0_45, %c0_46, %c0_47, %c0_48], %58 {strides = array<i32>} : memref<1x1x256x128xbf16, #tpu.memory_space<vmem>>, vector<1x1x256x128xbf16>,
    return
  }
  func.func @transform_1(%arg0: i32, %arg1: i32) -> (i32, i32, i32) {
    %c0_i32 = arith.constant 0 : i32
    %c0_i32_0 = arith.constant 0 : i32
    %c0_i32_1 = arith.constant 0 : i32
    %c0_i32_2 = arith.constant 0 : i32
    return %c0_i32, %c0_i32_0, %c0_i32_1 : i32, i32, i32
  }
  func.func @transform_2(%arg0: i32, %arg1: i32) -> (i32, i32) {
    %c0_i32 = arith.constant 0 : i32
    %c0_i32_0 = arith.constant 0 : i32
    %c0_i32_1 = arith.constant 0 : i32
    return %c0_i32, %c0_i32_0 : i32, i32
  }
  func.func @transform_3(%arg0: i32, %arg1: i32) -> (i32, i32, i32, i32) {
    %c0_i32 = arith.constant 0 : i32
    %c0_i32_0 = arith.constant 0 : i32
    %c0_i32_1 = arith.constant 0 : i32
    return %arg0, %arg1, %c0_i32, %c0_i32_0 : i32, i32, i32, i32
  }
}

</mosaic_0001>

<bundles_post_ra>
// kernel: discriminator_block_forward.1
= control target key start
LH: loop header
LB: loop body
LE: loop exit
PB: predicated region body
PF: predicated region fallthrough
CT: control target
= control target key end

     0   :  { %s2286_s12 = smov 0   ;;  %s2288_s13 = smov 0   ;;  %s2538_s0 = inlined_call_operand.vmem [shape: bf16[2,288,128], index: 0, kind: input, shape index: {}]   ;;  %s2539_s1 = inlined_call_operand.vmem [shape: bf16[3,128,128], index: 1, kind: input, shape index: {}]   ;;  %s2540_s2 = inlined_call_operand.vmem [shape: f32[1,128], index: 2, kind: input, shape index: {}]   ;;  %s2541_s3 = inlined_call_operand.vmem [shape: bf16[2,1,256,128], index: 3, kind: output, shape index: {}]  }
   0x1   :  { %s2290_s14 = smov 0  }
   0x2 LB: > { %s25_s15 = sadd.s32 1, %s2260_s13  ;;  %p1673_p0 = scmp.ge.s32.totalorder %s2264_s14, 1  ;;  %s2264_s14 = sphi %s2290_s14, %s13_s14   ;;  %s2260_s13 = sphi %s2288_s13, %s2543_s13   ;;  %s2256_s12 = sphi %s2286_s12, %s2542_s12  }
   0x3   : > { %p27_p1 = scmp.ge.s32.totalorder %s25_s15, 2  ;;  %p117_p2 = scmp.lt.s32.totalorder %s2264_s14, 3 }
   0x5   : > { %s2545_s15 = smov (%p27_p1, %s25_s15), 0  ;;  %p118_p3 = pnand %p1673_p0, %p117_p2 }
   0x6   : > { %p138_p4 = scmp.lt.s32.totalorder (!%p118_p3), %s2256_s12, 1  ;;  %s2021_s16 = smul.u32 (!%p118_p3), 144, %s2256_s12 }
   0x7   : > { %121 = sbr.rel (%p118_p3) target bundleno = 394 (0x18a), region = 28 }
   0x8   : > { %s2307_s19 = scalar_lea.vmem (!%p118_p3), %s2538_s0, %s2021_s16 }
   0xc   : > { %s2547_s12 = smov (!%p138_p4, %s2256_s12), 1  ;;  %v180_v0 = vld [vmem:[%s2307_s19] sm:$0xff]  ;;  %v182_v1 = vld [vmem:[%s2307_s19 + $0x8] sm:$0xff]  ;;  %v184_v2 = vld [vmem:[%s2307_s19 + $0x10] sm:$0xff] }
   0xd   : > { %s2020_s20 = sshll.u32 %s2547_s12, 7  ;;  %181 = vst [vmem:[#allocation2] sm:$0xff] %v180_v0  ;;  %v186_v3 = vld [vmem:[%s2307_s19 + $0x18] sm:$0xff]  ;;  %v188_v4 = vld [vmem:[%s2307_s19 + $0x20] sm:$0xff]  ;;  %v190_v5 = vld [vmem:[%s2307_s19 + $0x28] sm:$0xff] }
   0xe   : > { %s2315_s23 = scalar_lea.vmem %s2541_s3, %s2020_s20  ;;  %183 = vst [vmem:[#allocation2 + $0x38] sm:$0xff] %v182_v1  ;;  %v192_v6 = vld [vmem:[%s2307_s19 + $0x30] sm:$0xff]  ;;  %v194_v7 = vld [vmem:[%s2307_s19 + $0x38] sm:$0xff]  ;;  %v196_v8 = vld [vmem:[%s2307_s19 + $0x40] sm:$0xff] }
   0xf   : > { %185 = vst [vmem:[#allocation2 + $0x78] sm:$0xff] %v184_v2  ;;  %v198_v9 = vld [vmem:[%s2307_s19 + $0x48] sm:$0xff]  ;;  %v200_v10 = vld [vmem:[%s2307_s19 + $0x50] sm:$0xff]  ;;  %v202_v11 = vld [vmem:[%s2307_s19 + $0x58] sm:$0xff] }
  0x10   : > { %187 = vst [vmem:[#allocation2 + $0x58] sm:$0xff] %v186_v3  ;;  %v204_v12 = vld [vmem:[%s2307_s19 + $0x60] sm:$0xff]  ;;  %v206_v13 = vld [vmem:[%s2307_s19 + $0x68] sm:$0xff]  ;;  %v208_v14 = vld [vmem:[%s2307_s19 + $0x70] sm:$0xff] }
  0x11   : > { %189 = vst [vmem:[#allocation2 + $0x20] sm:$0xff] %v188_v4  ;;  %v210_v15 = vld [vmem:[%s2307_s19 + $0x78] sm:$0xff]  ;;  %v212_v16 = vld [vmem:[%s2307_s19 + $0x80] sm:$0xff]  ;;  %v214_v17 = vld [vmem:[%s2307_s19 + $0x88] sm:$0xff] }
  0x12   : > { %191 = vst [vmem:[#allocation2 + $0x8] sm:$0xff] %v190_v5 }
  0x13   : > { %193 = vst [vmem:[#allocation2 + $0x70] sm:$0xff] %v192_v6 }
  0x14   : > { %195 = vst [vmem:[#allocation2 + $0x80] sm:$0xff] %v194_v7 }
  0x15   : > { %197 = vst [vmem:[#allocation2 + $0x88] sm:$0xff] %v196_v8 }
  0x16   : > { %199 = vst [vmem:[#allocation2 + $0x40] sm:$0xff] %v198_v9 }
  0x17   : > { %201 = vst [vmem:[#allocation2 + $0x50] sm:$0xff] %v200_v10 }
  0x18   : > { %203 = vst [vmem:[#allocation2 + $0x28] sm:$0xff] %v202_v11 }
  0x19   : > { %205 = vst [vmem:[#allocation2 + $0x10] sm:$0xff] %v204_v12 }
  0x1a   : > { %207 = vst [vmem:[#allocation2 + $0x48] sm:$0xff] %v206_v13 }
  0x1b   : > { %209 = vst [vmem:[#allocation2 + $0x30] sm:$0xff] %v208_v14 }
  0x1c   : > { %211 = vst [vmem:[#allocation2 + $0x18] sm:$0xff] %v210_v15 }
  0x1d   : > { %213 = vst [vmem:[#allocation2 + $0x68] sm:$0xff] %v212_v16 }
  0x1e   : > { %215 = vst [vmem:[#allocation2 + $0x60] sm:$0xff] %v214_v17 }
  0x1f   : > { %221 = vsyncadd [#allocation4], 2304 }
  0x20   : > { %2252 = dma.done.wait [#allocation4], 2304 }
  0x21   : > { %2253 = vsyncadd [#allocation4], 4294964992  ;;  %v2047_v18 = vld [vmem:[%s2539_s1 + $0x38] sm:$0xff]  ;;  %v2046_v21 = vld [vmem:[%s2539_s1 + $0x30] sm:$0xff] }
  0x22   : > { %v2071_v19 = vld [vmem:[%s2539_s1 + $0x78] sm:$0xff]  ;;  %491 = vmatpush.bf16.msra.mxu0 %v2047_v18  ;;  %2191 = vmatpush.bf16.msra.mxu3 %v2047_v18  ;;  %v2070_v22 = vld [vmem:[%s2539_s1 + $0x70] sm:$0xff]  ;;  %v2045_v24 = vld [vmem:[%s2539_s1 + $0x28] sm:$0xff] }
  0x23   : > { %v2341_v20 = vld [vmem:[%s2539_s1 + $0xb8] sm:$0xff]  ;;  %837 = vmatpush.bf16.msra.mxu1 %v2071_v19  ;;  %v2353_v23 = vld [vmem:[%s2539_s1 + $0xb0] sm:$0xff]  ;;  %v2069_v25 = vld [vmem:[%s2539_s1 + $0x68] sm:$0xff] }
  0x24   : > { %1215 = vmatpush.bf16.msra.mxu2 %v2341_v20  ;;  %v2365_v26 = vld [vmem:[%s2539_s1 + $0xa8] sm:$0xff]  ;;  %v2044_v27 = vld [vmem:[%s2539_s1 + $0x20] sm:$0xff]  ;;  %v2043_v30 = vld [vmem:[%s2539_s1 + $0x18] sm:$0xff] }
  0x25   : > { %v2068_v28 = vld [vmem:[%s2539_s1 + $0x60] sm:$0xff]  ;;  %v2067_v31 = vld [vmem:[%s2539_s1 + $0x58] sm:$0xff]  ;;  %v2042_v33 = vld [vmem:[%s2539_s1 + $0x10] sm:$0xff] }
  0x26   : > { %492 = vmatpush.bf16.msra.mxu0 %v2046_v21  ;;  %2192 = vmatpush.bf16.msra.mxu3 %v2046_v21  ;;  %v2377_v29 = vld [vmem:[%s2539_s1 + $0xa0] sm:$0xff]  ;;  %v2389_v32 = vld [vmem:[%s2539_s1 + $0x98] sm:$0xff]  ;;  %v2066_v34 = vld [vmem:[%s2539_s1 + $0x50] sm:$0xff] }
  0x27   : > { %838 = vmatpush.bf16.msra.mxu1 %v2070_v22  ;;  %v2401_v35 = vld [vmem:[%s2539_s1 + $0x90] sm:$0xff]  ;;  %v2041_v36 = vld [vmem:[%s2539_s1 + $0x8] sm:$0xff]  ;;  %v2040_v39 = vld [vmem:[%s2539_s1] sm:$0xff] }
  0x28   : > { %1216 = vmatpush.bf16.msra.mxu2 %v2353_v23  ;;  %v2065_v37 = vld [vmem:[%s2539_s1 + $0x48] sm:$0xff]  ;;  %v2064_v40 = vld [vmem:[%s2539_s1 + $0x40] sm:$0xff]  ;;  %v2036_v43 = vld [vmem:[#allocation2 + $0x10] sm:$0xff] }
  0x29   : > { %v2089_v38 = vld [vmem:[%s2539_s1 + $0x88] sm:$0xff]  ;;  %v2088_v41 = vld [vmem:[%s2539_s1 + $0x80] sm:$0xff]  ;;  %v2048_v44 = vld [vmem:[#allocation2 + $0x38] sm:$0xff] }
  0x2a   : > { %493 = vmatpush.bf16.msra.mxu0 %v2045_v24  ;;  %2193 = vmatpush.bf16.msra.mxu3 %v2045_v24  ;;  %v2024_v42 = vld [vmem:[#allocation2] sm:$0xff]  ;;  %v2072_v45 = vld [vmem:[#allocation2 + $0x78] sm:$0xff]  ;;  %v2037_v47 = vld [vmem:[#allocation2 + $0x48] sm:$0xff] }
  0x2b   : > { %839 = vmatpush.bf16.msra.mxu1 %v2069_v25  ;;  %v2025_v46 = vld [vmem:[#allocation2 + $0x38] sm:$0xff]  ;;  %v2038_v51 = vld [vmem:[#allocation2 + $0x30] sm:$0xff]  ;;  %v2074_v53 = vld [vmem:[#allocation2 + $0x20] sm:$0xff] }
  0x2c   : > { %1217 = vmatpush.bf16.msra.mxu2 %v2365_v26  ;;  %v2049_v48 = vld [vmem:[#allocation2 + $0x78] sm:$0xff]  ;;  %v2051_v56 = vld [vmem:[#allocation2 + $0x20] sm:$0xff]  ;;  %v2075_v57 = vld [vmem:[#allocation2 + $0x8] sm:$0xff] }
  0x2d   : > { %v2073_v49 = vld [vmem:[#allocation2 + $0x58] sm:$0xff]  ;;  %v2028_v58 = vld [vmem:[#allocation2 + $0x20] sm:$0xff]  ;;  %v2060_v59 = vld [vmem:[#allocation2 + $0x48] sm:$0xff] }
  0x2e   : > { %494 = vmatpush.bf16.msra.mxu0 %v2044_v27  ;;  %2194 = vmatpush.bf16.msra.mxu3 %v2044_v27  ;;  %v2026_v50 = vld [vmem:[#allocation2 + $0x78] sm:$0xff]  ;;  %v2052_v60 = vld [vmem:[#allocation2 + $0x8] sm:$0xff]  ;;  %v2076_v61 = vld [vmem:[#allocation2 + $0x70] sm:$0xff] }
  0x2f   : > { %840 = vmatpush.bf16.msra.mxu1 %v2068_v28  ;;  %v2050_v52 = vld [vmem:[#allocation2 + $0x58] sm:$0xff]  ;;  %v2029_v62 = vld [vmem:[#allocation2 + $0x8] sm:$0xff]  ;;  %v2061_v63 = vld [vmem:[#allocation2 + $0x30] sm:$0xff] }
  0x30   : > { %1218 = vmatpush.bf16.msra.mxu2 %v2377_v29  ;;  %v2027_v54 = vld [vmem:[#allocation2 + $0x58] sm:$0xff]  ;;  %v2053_v0 = vld [vmem:[#allocation2 + $0x70] sm:$0xff]  ;;  %v2077_v1 = vld [vmem:[#allocation2 + $0x80] sm:$0xff] }
  0x31   : > { %v2039_v55 = vld [vmem:[#allocation2 + $0x18] sm:$0xff]  ;;  %v2030_v2 = vld [vmem:[#allocation2 + $0x70] sm:$0xff]  ;;  %v2054_v4 = vld [vmem:[#allocation2 + $0x80] sm:$0xff] }
  0x32   : > { %495 = vmatpush.bf16.msra.mxu0 %v2043_v30  ;;  %2195 = vmatpush.bf16.msra.mxu3 %v2043_v30  ;;  %v2062_v3 = vld [vmem:[#allocation2 + $0x18] sm:$0xff]  ;;  %v2078_v5 = vld [vmem:[#allocation2 + $0x88] sm:$0xff]  ;;  %v2031_v6 = vld [vmem:[#allocation2 + $0x80] sm:$0xff] }
  0x33   : > { %841 = vmatpush.bf16.msra.mxu1 %v2067_v31  ;;  %v2063_v7 = vld [vmem:[#allocation2 + $0x68] sm:$0xff]  ;;  %v2079_v9 = vld [vmem:[#allocation2 + $0x40] sm:$0xff]  ;;  %v2084_v11 = vld [vmem:[#allocation2 + $0x30] sm:$0xff] }
  0x34   : > { %1219 = vmatpush.bf16.msra.mxu2 %v2389_v32  ;;  %v2055_v8 = vld [vmem:[#allocation2 + $0x88] sm:$0xff]  ;;  %v2056_v13 = vld [vmem:[#allocation2 + $0x40] sm:$0xff]  ;;  %v2080_v14 = vld [vmem:[#allocation2 + $0x50] sm:$0xff] }
  0x35   : > { %v2032_v10 = vld [vmem:[#allocation2 + $0x88] sm:$0xff]  ;;  %v2033_v27 = vld [vmem:[#allocation2 + $0x40] sm:$0xff] }
  0x36   : > { %496 = vmatpush.bf16.msra.mxu0 %v2042_v33  ;;  %2196 = vmatpush.bf16.msra.mxu3 %v2042_v33 }
  0x37   : > { %842 = vmatpush.bf16.msra.mxu1 %v2066_v34 }
  0x38   : > { %1220 = vmatpush.bf16.msra.mxu2 %v2401_v35 }
  0x3a   : > { %497 = vmatpush.bf16.msra.mxu0 %v2041_v36  ;;  %2197 = vmatpush.bf16.msra.mxu3 %v2041_v36 }
  0x3b   : > { %843 = vmatpush.bf16.msra.mxu1 %v2065_v37 }
  0x3c   : > { %1221 = vmatpush.bf16.msra.mxu2 %v2089_v38 }
  0x3e   : > { %498 = vmatpush.bf16.msra.mxu0 %v2040_v39  ;;  %2198 = vmatpush.bf16.msra.mxu3 %v2040_v39 }
  0x3f   : > { %844 = vmatpush.bf16.msra.mxu1 %v2064_v40 }
  0x40   : > { %1222 = vmatpush.bf16.msra.mxu2 %v2088_v41 }
  0x41   : > { %499 = vmatmul.bf16.vlgmr.msra.gmra.mxu0 %v2024_v42  ;;  %559 = vmatmul.bf16.vlgmr.msra.gmra.mxu3 %v2036_v43 }
  0x42   : > { %2199 = vmatpush.bf16.msrb.mxu3 %v2071_v19  ;;  %845 = vmatmul.bf16.vlgmr.msra.gmra.mxu1 %v2048_v44 }
  0x43   : > { %1223 = vmatmul.bf16.vlgmr.msra.gmra.mxu2 %v2072_v45 }
  0x46   : > { %2200 = vmatpush.bf16.msrb.mxu3 %v2070_v22  ;;  %v2433_v22 = vld [vmem:[%s2540_s2] ss:$0 sm:$0xff] }
  0x4a   : > { %2201 = vmatpush.bf16.msrb.mxu3 %v2069_v25 }
  0x4e   : > { %2202 = vmatpush.bf16.msrb.mxu3 %v2068_v28  ;;  %v2085_v28 = vld [vmem:[#allocation2 + $0x18] sm:$0xff] }
  0x51   : > { %504 = vmatmul.bf16.gmra.mxu0 %v2025_v46  ;;  %564 = vmatmul.bf16.gmra.mxu3 %v2037_v47 }
  0x52   : > { %2203 = vmatpush.bf16.msrb.mxu3 %v2067_v31  ;;  %850 = vmatmul.bf16.gmra.mxu1 %v2049_v48  ;;  %v2057_v31 = vld [vmem:[#allocation2 + $0x50] sm:$0xff] }
  0x53   : > { %1228 = vmatmul.bf16.gmra.mxu2 %v2073_v49 }
  0x56   : > { %2204 = vmatpush.bf16.msrb.mxu3 %v2066_v34 }
  0x5a   : > { %2205 = vmatpush.bf16.msrb.mxu3 %v2065_v37 }
  0x5e   : > { %2206 = vmatpush.bf16.msrb.mxu3 %v2064_v40 }
  0x61   : > { %509 = vmatmul.bf16.gmra.mxu0 %v2026_v50  ;;  %569 = vmatmul.bf16.gmra.mxu3 %v2038_v51  ;;  %v2034_v50 = vld [vmem:[#allocation2 + $0x50] sm:$0xff]  ;;  %v2086_v51 = vld [vmem:[#allocation2 + $0x68] sm:$0xff] }
  0x62   : > { %2207 = vmatpush.bf16.msra.mxu3 %v2341_v20  ;;  %855 = vmatmul.bf16.gmra.mxu1 %v2050_v52 }
  0x63   : > { %1233 = vmatmul.bf16.gmra.mxu2 %v2074_v53 }
  0x66   : > { %2208 = vmatpush.bf16.msra.mxu3 %v2353_v23 }
  0x6a   : > { %2209 = vmatpush.bf16.msra.mxu3 %v2365_v26 }
  0x6e   : > { %2210 = vmatpush.bf16.msra.mxu3 %v2377_v29 }
  0x71   : > { %514 = vmatmul.bf16.gmra.mxu0 %v2027_v54  ;;  %574 = vmatmul.bf16.gmra.mxu3 %v2039_v55  ;;  %v2058_v54 = vld [vmem:[#allocation2 + $0x28] sm:$0xff]  ;;  %v2082_v55 = vld [vmem:[#allocation2 + $0x10] sm:$0xff] }
  0x72   : > { %2211 = vmatpush.bf16.msra.mxu3 %v2389_v32  ;;  %860 = vmatmul.bf16.gmra.mxu1 %v2051_v56  ;;  %v2081_v32 = vld [vmem:[#allocation2 + $0x28] sm:$0xff] }
  0x73   : > { %1238 = vmatmul.bf16.gmra.mxu2 %v2075_v57 }
  0x76   : > { %2212 = vmatpush.bf16.msra.mxu3 %v2401_v35 }
  0x7a   : > { %2213 = vmatpush.bf16.msra.mxu3 %v2089_v38 }
  0x7e   : > { %2214 = vmatpush.bf16.msra.mxu3 %v2088_v41 }
  0x81   : > { %519 = vmatmul.bf16.gmra.mxu0 %v2028_v58  ;;  %905 = vmatmul.bf16.vlgmr.msrb.gmra.mxu3 %v2060_v59 }
  0x82   : > { %865 = vmatmul.bf16.gmra.mxu1 %v2052_v60 }
  0x83   : > { %1243 = vmatmul.bf16.gmra.mxu2 %v2076_v61 }
  0x91   : > { %524 = vmatmul.bf16.gmra.mxu0 %v2029_v62  ;;  %910 = vmatmul.bf16.gmra.mxu3 %v2061_v63 }
  0x92   : > { %870 = vmatmul.bf16.gmra.mxu1 %v2053_v0 }
  0x93   : > { %1248 = vmatmul.bf16.gmra.mxu2 %v2077_v1 }
  0xa1   : > { %529 = vmatmul.bf16.gmra.mxu0 %v2030_v2  ;;  %915 = vmatmul.bf16.gmra.mxu3 %v2062_v3 }
  0xa2   : > { %875 = vmatmul.bf16.gmra.mxu1 %v2054_v4 }
  0xa3   : > { %1253 = vmatmul.bf16.gmra.mxu2 %v2078_v5 }
  0xb1   : > { %534 = vmatmul.bf16.gmra.mxu0 %v2031_v6  ;;  %920 = vmatmul.bf16.gmra.mxu3 %v2063_v7 }
  0xb2   : > { %880 = vmatmul.bf16.gmra.mxu1 %v2055_v8 }
  0xb3   : > { %1258 = vmatmul.bf16.gmra.mxu2 %v2079_v9  ;;  %v2035_v9 = vld [vmem:[#allocation2 + $0x28] sm:$0xff] }
  0xbe   : > { %v500_v12 = vpop.f32.mrf.mxu0 }
  0xbf   : > { %v846_v15 = vpop.f32.mrf.mxu1 }
  0xc0   : > { %v926_v16 = vadd.f32 %v846_v15, %v500_v12 }
  0xc1   : > { %539 = vmatmul.bf16.gmra.mxu0 %v2032_v10  ;;  %1283 = vmatmul.bf16.vlgmr.msra.gmra.mxu3 %v2084_v11  ;;  %v2087_v10 = vld [vmem:[#allocation2 + $0x60] sm:$0xff] }
  0xc2   : > { %885 = vmatmul.bf16.gmra.mxu1 %v2056_v13  ;;  %v2059_v13 = vld [vmem:[#allocation2 + $0x10] sm:$0xff] }
  0xc3   : > { %1263 = vmatmul.bf16.gmra.mxu2 %v2080_v14  ;;  %v2083_v14 = vld [vmem:[#allocation2 + $0x48] sm:$0xff] }
  0xc4   : > { %v2428_v17 = vpop.f32.mrf.mxu3 }
  0xc6   : > { %v1224_v18 = vpop.f32.mrf.mxu2  ;;  %v502_v19 = vpop.f32.mrf.mxu0 }
  0xc7   : > { %v848_v20 = vpop.f32.mrf.mxu1  ;;  %v1304_v21 = vadd.f32 %v1224_v18, %v926_v16 }
  0xc8   : > { %v927_v24 = vadd.f32 %v848_v20, %v502_v19 }
  0xc9   : > { %v1404_v23 = vadd.f32 %v2433_v22, %v1304_v21 }
  0xcb   : > { %v1436_v34 = vmul.f32 0.2, %v1404_v23 }
  0xcc   : > { %v2436_v25 = vpop.f32.mrf.mxu3 }
  0xcd   : > { %v1468_v37 = vmax.f32 %v1404_v23, %v1436_v34 }
  0xce   : > { %v1226_v26 = vpop.f32.mrf.mxu2  ;;  %v505_v30 = vpop.f32.mrf.mxu0 }
  0xcf   : > { %v1305_v29 = vadd.f32 %v1226_v26, %v927_v24  ;;  %v851_v33 = vpop.f32.mrf.mxu1 }
  0xd0   : > { %v928_v39 = vadd.f32 %v851_v33, %v505_v30 }
  0xd1   : > { %v1405_v35 = vadd.f32 %v2433_v22, %v1305_v29  ;;  %544 = vmatmul.bf16.gmra.mxu0 %v2033_v27  ;;  %1288 = vmatmul.bf16.gmra.mxu3 %v2085_v28 }
  0xd2   : > { %890 = vmatmul.bf16.gmra.mxu1 %v2057_v31 }
  0xd3   : > { %v1437_v36 = vmul.f32 0.2, %v1405_v35  ;;  %1268 = vmatmul.bf16.gmra.mxu2 %v2081_v32 }
  0xd4   : > { %v2439_v40 = vpop.f32.mrf.mxu3 }
  0xd5   : > { %v1469_v38 = vmax.f32 %v1405_v35, %v1437_v36 }
  0xd6   : > { %v1229_v41 = vpop.f32.mrf.mxu2  ;;  %v507_v43 = vpop.f32.mrf.mxu0 }
  0xd7   : > { %v2099_v42 = vpack.c.bf16 %v1469_v38, %v1468_v37  ;;  %v853_v44 = vpop.f32.mrf.mxu1  ;;  %v1306_v45 = vadd.f32 %v1229_v41, %v928_v39 }
  0xd8   : > { %v929_v47 = vadd.f32 %v853_v44, %v507_v43 }
  0xd9   : > { %2100 = vst [vmem:[%s2315_s23] sm:$0xff] %v2099_v42   ;;  %v1406_v46 = vadd.f32 %v2433_v22, %v1306_v45 }
  0xdb   : > { %v1438_v57 = vmul.f32 0.2, %v1406_v46 }
  0xdc   : > { %v2443_v48 = vpop.f32.mrf.mxu3 }
  0xdd   : > { %v1470_v60 = vmax.f32 %v1406_v46, %v1438_v57 }
  0xde   : > { %v1231_v49 = vpop.f32.mrf.mxu2  ;;  %v510_v53 = vpop.f32.mrf.mxu0 }
  0xdf   : > { %v1307_v52 = vadd.f32 %v1231_v49, %v929_v47  ;;  %v856_v56 = vpop.f32.mrf.mxu1 }
  0xe0   : > { %v930_v62 = vadd.f32 %v856_v56, %v510_v53 }
  0xe1   : > { %v1407_v58 = vadd.f32 %v2433_v22, %v1307_v52  ;;  %549 = vmatmul.bf16.gmra.mxu0 %v2034_v50  ;;  %1293 = vmatmul.bf16.gmra.mxu3 %v2086_v51 }
  0xe2   : > { %895 = vmatmul.bf16.gmra.mxu1 %v2058_v54 }
  0xe3   : > { %v1439_v59 = vmul.f32 0.2, %v1407_v58  ;;  %1273 = vmatmul.bf16.gmra.mxu2 %v2082_v55 }
  0xe4   : > { %v2446_v63 = vpop.f32.mrf.mxu3 }
  0xe5   : > { %v1471_v61 = vmax.f32 %v1407_v58, %v1439_v59 }
  0xe6   : > { %v1234_v0 = vpop.f32.mrf.mxu2  ;;  %v512_v2 = vpop.f32.mrf.mxu0 }
  0xe7   : > { %v2104_v1 = vpack.c.bf16 %v1471_v61, %v1470_v60  ;;  %v858_v3 = vpop.f32.mrf.mxu1  ;;  %v1308_v4 = vadd.f32 %v1234_v0, %v930_v62 }
  0xe8   : > { %v931_v6 = vadd.f32 %v858_v3, %v512_v2 }
  0xe9   : > { %2176 = vst [vmem:[%s2315_s23 + $0x8] sm:$0xff] %v2104_v1   ;;  %v1408_v5 = vadd.f32 %v2433_v22, %v1308_v4 }
  0xeb   : > { %v1440_v16 = vmul.f32 0.2, %v1408_v5 }
  0xec   : > { %v2450_v7 = vpop.f32.mrf.mxu3 }
  0xed   : > { %v1472_v20 = vmax.f32 %v1408_v5, %v1440_v16 }
  0xee   : > { %v1236_v8 = vpop.f32.mrf.mxu2  ;;  %v515_v12 = vpop.f32.mrf.mxu0 }
  0xef   : > { %v1309_v11 = vadd.f32 %v1236_v8, %v931_v6  ;;  %v861_v15 = vpop.f32.mrf.mxu1 }
  0xf0   : > { %v932_v23 = vadd.f32 %v861_v15, %v515_v12 }
  0xf1   : > { %v1409_v18 = vadd.f32 %v2433_v22, %v1309_v11  ;;  %554 = vmatmul.bf16.gmra.mxu0 %v2035_v9  ;;  %1298 = vmatmul.bf16.gmra.mxu3 %v2087_v10 }
  0xf2   : > { %900 = vmatmul.bf16.gmra.mxu1 %v2059_v13 }
  0xf3   : > { %v1441_v19 = vmul.f32 0.2, %v1409_v18  ;;  %1278 = vmatmul.bf16.gmra.mxu2 %v2083_v14 }
  0xf4   : > { %v2453_v24 = vpop.f32.mrf.mxu3 }
  0xf5   : > { %v1473_v21 = vmax.f32 %v1409_v18, %v1441_v19 }
  0xf6   : > { %v1239_v26 = vpop.f32.mrf.mxu2  ;;  %v517_v28 = vpop.f32.mrf.mxu0 }
  0xf7   : > { %v2109_v27 = vpack.c.bf16 %v1473_v21, %v1472_v20  ;;  %v863_v29 = vpop.f32.mrf.mxu1  ;;  %v1310_v30 = vadd.f32 %v1239_v26, %v932_v23 }
  0xf8   : > { %v933_v32 = vadd.f32 %v863_v29, %v517_v28 }
  0xf9   : > { %2177 = vst [vmem:[%s2315_s23 + $0x10] sm:$0xff] %v2109_v27   ;;  %v1410_v31 = vadd.f32 %v2433_v22, %v1310_v30 }
  0xfb   : > { %v1442_v38 = vmul.f32 0.2, %v1410_v31 }
  0xfc   : > { %v2457_v33 = vpop.f32.mrf.mxu3 }
  0xfd   : > { %v1474_v42 = vmax.f32 %v1410_v31, %v1442_v38 }
  0xfe   : > { %v1241_v34 = vpop.f32.mrf.mxu2  ;;  %v520_v36 = vpop.f32.mrf.mxu0 }
  0xff   : > { %v1311_v35 = vadd.f32 %v1241_v34, %v933_v32  ;;  %v866_v37 = vpop.f32.mrf.mxu1 }
 0x100   : > { %v934_v44 = vadd.f32 %v866_v37, %v520_v36 }
 0x101   : > { %v1411_v39 = vadd.f32 %v2433_v22, %v1311_v35 }
 0x103   : > { %v1443_v41 = vmul.f32 0.2, %v1411_v39 }
 0x104   : > { %v906_v45 = vpop.f32.mrf.mxu3 }
 0x105   : > { %v1475_v43 = vmax.f32 %v1411_v39, %v1443_v41  ;;  %v2461_v46 = vadd.f32 %v906_v45, %v2428_v17 }
 0x106   : > { %v1244_v47 = vpop.f32.mrf.mxu2  ;;  %v522_v50 = vpop.f32.mrf.mxu0 }
 0x107   : > { %v2114_v49 = vpack.c.bf16 %v1475_v43, %v1474_v42  ;;  %v868_v51 = vpop.f32.mrf.mxu1  ;;  %v1312_v52 = vadd.f32 %v1244_v47, %v934_v44 }
 0x108   : > { %v935_v54 = vadd.f32 %v868_v51, %v522_v50 }
 0x109   : > { %2178 = vst [vmem:[%s2315_s23 + $0x18] sm:$0xff] %v2114_v49   ;;  %v1412_v53 = vadd.f32 %v2433_v22, %v1312_v52 }
 0x10b   : > { %v1444_v60 = vmul.f32 0.2, %v1412_v53 }
 0x10c   : > { %v2465_v55 = vpop.f32.mrf.mxu3 }
 0x10d   : > { %v1476_v62 = vmax.f32 %v1412_v53, %v1444_v60 }
 0x10e   : > { %v1246_v56 = vpop.f32.mrf.mxu2  ;;  %v525_v58 = vpop.f32.mrf.mxu0 }
 0x10f   : > { %v1313_v57 = vadd.f32 %v1246_v56, %v935_v54  ;;  %v871_v59 = vpop.f32.mrf.mxu1 }
 0x110   : > { %v936_v1 = vadd.f32 %v871_v59, %v525_v58 }
 0x111   : > { %v1413_v17 = vadd.f32 %v2433_v22, %v1313_v57 }
 0x113   : > { %v1445_v61 = vmul.f32 0.2, %v1413_v17 }
 0x114   : > { %v911_v2 = vpop.f32.mrf.mxu3 }
 0x115   : > { %v1477_v0 = vmax.f32 %v1413_v17, %v1445_v61  ;;  %v2469_v3 = vadd.f32 %v911_v2, %v2439_v40 }
 0x116   : > { %v1249_v4 = vpop.f32.mrf.mxu2  ;;  %v527_v6 = vpop.f32.mrf.mxu0 }
 0x117   : > { %v2119_v5 = vpack.c.bf16 %v1477_v0, %v1476_v62  ;;  %v873_v8 = vpop.f32.mrf.mxu1  ;;  %v1314_v9 = vadd.f32 %v1249_v4, %v936_v1 }
 0x118   : > { %v937_v11 = vadd.f32 %v873_v8, %v527_v6 }
 0x119   : > { %2179 = vst [vmem:[%s2315_s23 + $0x20] sm:$0xff] %v2119_v5   ;;  %v1414_v10 = vadd.f32 %v2433_v22, %v1314_v9 }
 0x11b   : > { %v1446_v18 = vmul.f32 0.2, %v1414_v10 }
 0x11c   : > { %v2473_v12 = vpop.f32.mrf.mxu3 }
 0x11d   : > { %v1478_v20 = vmax.f32 %v1414_v10, %v1446_v18 }
 0x11e   : > { %v1251_v13 = vpop.f32.mrf.mxu2  ;;  %v530_v15 = vpop.f32.mrf.mxu0 }
 0x11f   : > { %v1315_v14 = vadd.f32 %v1251_v13, %v937_v11  ;;  %v876_v16 = vpop.f32.mrf.mxu1 }
 0x120   : > { %v938_v23 = vadd.f32 %v876_v16, %v530_v15  ;;  %v951_v15 = vadd.f32 %v2465_v55, %v2436_v25 }
 0x121   : > { %v1415_v40 = vadd.f32 %v2433_v22, %v1315_v14 }
 0x123   : > { %v1447_v19 = vmul.f32 0.2, %v1415_v40 }
 0x124   : > { %v916_v26 = vpop.f32.mrf.mxu3 }
 0x125   : > { %v1479_v21 = vmax.f32 %v1415_v40, %v1447_v19  ;;  %v2477_v27 = vadd.f32 %v916_v26, %v2446_v63 }
 0x126   : > { %v1254_v28 = vpop.f32.mrf.mxu2  ;;  %v532_v30 = vpop.f32.mrf.mxu0 }
 0x127   : > { %v2124_v29 = vpack.c.bf16 %v1479_v21, %v1478_v20  ;;  %v878_v31 = vpop.f32.mrf.mxu1  ;;  %v1316_v32 = vadd.f32 %v1254_v28, %v938_v23 }
 0x128   : > { %v939_v35 = vadd.f32 %v878_v31, %v532_v30 }
 0x129   : > { %2180 = vst [vmem:[%s2315_s23 + $0x28] sm:$0xff] %v2124_v29   ;;  %v1416_v34 = vadd.f32 %v2433_v22, %v1316_v32 }
 0x12b   : > { %v1448_v42 = vmul.f32 0.2, %v1416_v34 }
 0x12c   : > { %v2481_v36 = vpop.f32.mrf.mxu3 }
 0x12d   : > { %v1480_v44 = vmax.f32 %v1416_v34, %v1448_v42 }
 0x12e   : > { %v1256_v37 = vpop.f32.mrf.mxu2  ;;  %v535_v39 = vpop.f32.mrf.mxu0 }
 0x12f   : > { %v1317_v38 = vadd.f32 %v1256_v37, %v939_v35  ;;  %v881_v41 = vpop.f32.mrf.mxu1 }
 0x130   : > { %v940_v47 = vadd.f32 %v881_v41, %v535_v39 }
 0x131   : > { %v1417_v63 = vadd.f32 %v2433_v22, %v1317_v38 }
 0x133   : > { %v1449_v43 = vmul.f32 0.2, %v1417_v63 }
 0x134   : > { %v921_v49 = vpop.f32.mrf.mxu3 }
 0x135   : > { %v1481_v45 = vmax.f32 %v1417_v63, %v1449_v43  ;;  %v2485_v50 = vadd.f32 %v921_v49, %v2453_v24  ;;  %v953_v49 = vadd.f32 %v2473_v12, %v2443_v48 }
 0x136   : > { %v1259_v51 = vpop.f32.mrf.mxu2  ;;  %v537_v53 = vpop.f32.mrf.mxu0 }
 0x137   : > { %v2129_v52 = vpack.c.bf16 %v1481_v45, %v1480_v44  ;;  %v883_v54 = vpop.f32.mrf.mxu1  ;;  %v1318_v56 = vadd.f32 %v1259_v51, %v940_v47 }
 0x138   : > { %v941_v58 = vadd.f32 %v883_v54, %v537_v53 }
 0x139   : > { %2181 = vst [vmem:[%s2315_s23 + $0x30] sm:$0xff] %v2129_v52   ;;  %v1418_v57 = vadd.f32 %v2433_v22, %v1318_v56 }
 0x13b   : > { %v1450_v0 = vmul.f32 0.2, %v1418_v57 }
 0x13c   : > { %v2489_v59 = vpop.f32.mrf.mxu3 }
 0x13d   : > { %v1482_v2 = vmax.f32 %v1418_v57, %v1450_v0 }
 0x13e   : > { %v1261_v60 = vpop.f32.mrf.mxu2  ;;  %v540_v61 = vpop.f32.mrf.mxu0 }
 0x13f   : > { %v1319_v17 = vadd.f32 %v1261_v60, %v941_v58  ;;  %v886_v62 = vpop.f32.mrf.mxu1 }
 0x140   : > { %v942_v5 = vadd.f32 %v886_v62, %v540_v61 }
 0x141   : > { %v1419_v24 = vadd.f32 %v2433_v22, %v1319_v17 }
 0x143   : > { %v1451_v1 = vmul.f32 0.2, %v1419_v24 }
 0x144   : > { %v1284_v6 = vpop.f32.mrf.mxu3 }
 0x145   : > { %v1483_v4 = vmax.f32 %v1419_v24, %v1451_v1  ;;  %v1328_v11 = vadd.f32 %v1284_v6, %v2461_v46 }
 0x146   : > { %v1264_v8 = vpop.f32.mrf.mxu2  ;;  %v542_v10 = vpop.f32.mrf.mxu0 }
 0x147   : > { %v2134_v9 = vpack.c.bf16 %v1483_v4, %v1482_v2  ;;  %v888_v13 = vpop.f32.mrf.mxu1  ;;  %v1320_v14 = vadd.f32 %v1264_v8, %v942_v5  ;;  %v1428_v16 = vadd.f32 %v2433_v22, %v1328_v11 }
 0x148   : > { %v943_v40 = vadd.f32 %v888_v13, %v542_v10 }
 0x149   : > { %2182 = vst [vmem:[%s2315_s23 + $0x38] sm:$0xff] %v2134_v9   ;;  %v1420_v18 = vadd.f32 %v2433_v22, %v1320_v14  ;;  %v1460_v28 = vmul.f32 0.2, %v1428_v16 }
 0x14b   : > { %v1452_v30 = vmul.f32 0.2, %v1420_v18  ;;  %v1492_v32 = vmax.f32 %v1428_v16, %v1460_v28  ;;  %v955_v16 = vadd.f32 %v2481_v36, %v2450_v7 }
 0x14c   : > { %v1286_v19 = vpop.f32.mrf.mxu3 }
 0x14d   : > { %v1329_v21 = vadd.f32 %v1286_v19, %v951_v15  ;;  %v1484_v35 = vmax.f32 %v1420_v18, %v1452_v30 }
 0x14e   : > { %v1266_v20 = vpop.f32.mrf.mxu2  ;;  %v545_v26 = vpop.f32.mrf.mxu0 }
 0x14f   : > { %v1321_v23 = vadd.f32 %v1266_v20, %v943_v40  ;;  %v1429_v29 = vadd.f32 %v2433_v22, %v1329_v21  ;;  %v891_v46 = vpop.f32.mrf.mxu1 }
 0x150   : > { %v944_v38 = vadd.f32 %v891_v46, %v545_v26 }
 0x151   : > { %v1421_v31 = vadd.f32 %v2433_v22, %v1321_v23  ;;  %v1461_v25 = vmul.f32 0.2, %v1429_v29 }
 0x153   : > { %v1453_v55 = vmul.f32 0.2, %v1421_v31  ;;  %v1493_v34 = vmax.f32 %v1429_v29, %v1461_v25 }
 0x154   : > { %v1289_v39 = vpop.f32.mrf.mxu3 }
 0x155   : > { %v1485_v37 = vmax.f32 %v1421_v31, %v1453_v55  ;;  %v2159_v41 = vpack.c.bf16 %v1493_v34, %v1492_v32  ;;  %v1330_v44 = vadd.f32 %v1289_v39, %v2469_v3 }
 0x156   : > { %v1269_v42 = vpop.f32.mrf.mxu2  ;;  %v547_v43 = vpop.f32.mrf.mxu0 }
 0x157   : > { %v2139_v63 = vpack.c.bf16 %v1485_v37, %v1484_v35  ;;  %2187 = vst [vmem:[%s2315_s23 + $0x60] sm:$0xff] %v2159_v41   ;;  %v893_v45 = vpop.f32.mrf.mxu1  ;;  %v1322_v47 = vadd.f32 %v1269_v42, %v944_v38  ;;  %v1430_v51 = vadd.f32 %v2433_v22, %v1330_v44 }
 0x158   : > { %v945_v53 = vadd.f32 %v893_v45, %v547_v43  ;;  %v957_v45 = vadd.f32 %v2489_v59, %v2457_v33 }
 0x159   : > { %2183 = vst [vmem:[%s2315_s23 + $0x40] sm:$0xff] %v2139_v63   ;;  %v1422_v52 = vadd.f32 %v2433_v22, %v1322_v47  ;;  %v1462_v17 = vmul.f32 0.2, %v1430_v51 }
 0x15b   : > { %v1454_v62 = vmul.f32 0.2, %v1422_v52  ;;  %v1494_v24 = vmax.f32 %v1430_v51, %v1462_v17 }
 0x15c   : > { %v1291_v54 = vpop.f32.mrf.mxu3 }
 0x15d   : > { %v1331_v57 = vadd.f32 %v1291_v54, %v953_v49  ;;  %v1486_v2 = vmax.f32 %v1422_v52, %v1454_v62 }
 0x15e   : > { %v1271_v56 = vpop.f32.mrf.mxu2  ;;  %v550_v60 = vpop.f32.mrf.mxu0 }
 0x15f   : > { %v1323_v58 = vadd.f32 %v1271_v56, %v945_v53  ;;  %v1431_v61 = vadd.f32 %v2433_v22, %v1331_v57  ;;  %v896_v3 = vpop.f32.mrf.mxu1 }
 0x160   : > { %v946_v5 = vadd.f32 %v896_v3, %v550_v60 }
 0x161   : > { %v1423_v0 = vadd.f32 %v2433_v22, %v1323_v58  ;;  %v1463_v48 = vmul.f32 0.2, %v1431_v61 }
 0x163   : > { %v1455_v12 = vmul.f32 0.2, %v1423_v0  ;;  %v1495_v1 = vmax.f32 %v1431_v61, %v1463_v48 }
 0x164   : > { %v1294_v6 = vpop.f32.mrf.mxu3 }
 0x165   : > { %v1487_v4 = vmax.f32 %v1423_v0, %v1455_v12  ;;  %v2164_v8 = vpack.c.bf16 %v1495_v1, %v1494_v24  ;;  %v1332_v13 = vadd.f32 %v1294_v6, %v2477_v27 }
 0x166   : > { %v1274_v9 = vpop.f32.mrf.mxu2  ;;  %v552_v11 = vpop.f32.mrf.mxu0 }
 0x167   : > { %v2144_v10 = vpack.c.bf16 %v1487_v4, %v1486_v2  ;;  %2188 = vst [vmem:[%s2315_s23 + $0x68] sm:$0xff] %v2164_v8   ;;  %v898_v14 = vpop.f32.mrf.mxu1  ;;  %v1324_v15 = vadd.f32 %v1274_v9, %v946_v5  ;;  %v1432_v18 = vadd.f32 %v2433_v22, %v1332_v13 }
 0x168   : > { %v947_v19 = vadd.f32 %v898_v14, %v552_v11 }
 0x169   : > { %2184 = vst [vmem:[%s2315_s23 + $0x48] sm:$0xff] %v2144_v10   ;;  %v1424_v40 = vadd.f32 %v2433_v22, %v1324_v15  ;;  %v1464_v28 = vmul.f32 0.2, %v1432_v18 }
 0x16b   : > { %v1456_v30 = vmul.f32 0.2, %v1424_v40  ;;  %v1496_v25 = vmax.f32 %v1432_v18, %v1464_v28 }
 0x16c   : > { %v1296_v20 = vpop.f32.mrf.mxu3 }
 0x16d   : > { %v1333_v23 = vadd.f32 %v1296_v20, %v955_v16  ;;  %v1488_v32 = vmax.f32 %v1424_v40, %v1456_v30 }
 0x16e   : > { %v1276_v21 = vpop.f32.mrf.mxu2  ;;  %v555_v27 = vpop.f32.mrf.mxu0 }
 0x16f   : > { %v1325_v26 = vadd.f32 %v1276_v21, %v947_v19  ;;  %v1433_v29 = vadd.f32 %v2433_v22, %v1333_v23  ;;  %v901_v46 = vpop.f32.mrf.mxu1 }
 0x170   : > { %v948_v35 = vadd.f32 %v901_v46, %v555_v27 }
 0x171   : > { %v1425_v31 = vadd.f32 %v2433_v22, %v1325_v26  ;;  %v1465_v7 = vmul.f32 0.2, %v1433_v29 }
 0x173   : > { %v1457_v36 = vmul.f32 0.2, %v1425_v31  ;;  %v1497_v55 = vmax.f32 %v1433_v29, %v1465_v7 }
 0x174   : > { %v1299_v37 = vpop.f32.mrf.mxu3 }
 0x175   : > { %v1489_v34 = vmax.f32 %v1425_v31, %v1457_v36  ;;  %v2169_v38 = vpack.c.bf16 %v1497_v55, %v1496_v25  ;;  %v1334_v42 = vadd.f32 %v1299_v37, %v2485_v50 }
 0x176   : > { %v1279_v39 = vpop.f32.mrf.mxu2  ;;  %v557_v43 = vpop.f32.mrf.mxu0 }
 0x177   : > { %v2149_v41 = vpack.c.bf16 %v1489_v34, %v1488_v32  ;;  %2189 = vst [vmem:[%s2315_s23 + $0x70] sm:$0xff] %v2169_v38   ;;  %v1326_v63 = vadd.f32 %v1279_v39, %v948_v35  ;;  %v903_v44 = vpop.f32.mrf.mxu1  ;;  %v1434_v47 = vadd.f32 %v2433_v22, %v1334_v42 }
 0x178   : > { %v949_v51 = vadd.f32 %v903_v44, %v557_v43 }
 0x179   : > { %2185 = vst [vmem:[%s2315_s23 + $0x50] sm:$0xff] %v2149_v41   ;;  %v1426_v49 = vadd.f32 %v2433_v22, %v1326_v63  ;;  %v1466_v57 = vmul.f32 0.2, %v1434_v47 }
 0x17b   : > { %v1458_v58 = vmul.f32 0.2, %v1426_v49  ;;  %v1498_v33 = vmax.f32 %v1434_v47, %v1466_v57 }
 0x17c   : > { %v1301_v52 = vpop.f32.mrf.mxu3 }
 0x17d   : > { %v1335_v54 = vadd.f32 %v1301_v52, %v957_v45  ;;  %v1490_v3 = vmax.f32 %v1426_v49, %v1458_v58 }
 0x17e   : > { %v1281_v53 = vpop.f32.mrf.mxu2 }
 0x17f   : > { %v1327_v56 = vadd.f32 %v1281_v53, %v949_v51  ;;  %v1435_v50 = vadd.f32 %v2433_v22, %v1335_v54 }
 0x181   : > { %v1427_v60 = vadd.f32 %v2433_v22, %v1327_v56  ;;  %v1467_v17 = vmul.f32 0.2, %v1435_v50 }
 0x183   : > { %v1459_v61 = vmul.f32 0.2, %v1427_v60  ;;  %v1499_v59 = vmax.f32 %v1435_v50, %v1467_v17 }
 0x185   : > { %v1491_v62 = vmax.f32 %v1427_v60, %v1459_v61  ;;  %v2174_v0 = vpack.c.bf16 %v1499_v59, %v1498_v33 }
 0x187   : > { %v2154_v48 = vpack.c.bf16 %v1491_v62, %v1490_v3  ;;  %2190 = vst [vmem:[%s2315_s23 + $0x78] sm:$0xff] %v2174_v0  }
 0x189   : > { %2186 = vst [vmem:[%s2315_s23 + $0x58] sm:$0xff] %v2154_v48  }
 0x18a PF: > { %s13_s14 = sadd.s32 1, %s2264_s14   ;;  %s2542_s12 = smov %s2260_s13 }
 0x18b   : > { %p10_p5 = scmp.ge.s32.totalorder %s13_s14, 4   ;;  %s2543_s13 = smov %s2545_s15 }
 0x18d   :  { %12 = sbr.rel (!%p10_p5) target bundleno = 2 (0x2), region = 118 }
 0x192   :  { %1593 = vsyncmov [#allocation4] }
 0x195   :  { %s1594_s28 = vpop.sfrf %1593 }
 0x196   :  { %p2018_p6 = scmp.ne.s32.totalorder %s1594_s28, 0 }
 0x198   :  { %1598 = shalt.err (%p2018_p6)  }
 0x199   :  { %1600 = vsyncmov [#allocation4 + $0x1] }
 0x19c   :  { %s1601_s29 = vpop.sfrf %1600 }
 0x19d   :  { %p2019_p7 = scmp.ne.s32.totalorder %s1601_s29, 0 }
 0x19f   :  { %1605 = shalt.err (%p2019_p7)  }

</bundles_post_ra>
